<compile_context>
chip_gen: v7x
topology: tpu7x:2x2x1
jax: 0.10.0
libtpu: 0.0.40
codegen_flags: <defaults>
</compile_context>

<pallas_src>
import numpy as np
import jax
import jax.numpy as jnp
from jax.experimental import pallas as pl
from jax.experimental.pallas import tpu as pltpu

EPS = 1e-5
LANE = 128


def _round_up(x, m):
    return ((x + m - 1) // m) * m


# ----------------------------- Pallas kernel --------------------------------
def _slowfast_kernel(frame_tbl, branch_tbl,          # scalar-prefetch refs (used by index_maps)
                     cols_ref, w_ref, shift_ref,     # inputs
                     o_ref,                          # output
                     acc_ref):                       # f32 VMEM accumulator
    """One grid step = one depth tap (kd) of one output frame (branch, n, do).

    cols_ref : (1, Kp, HWp)    bf16  2-D im2col of the selected input frame
    w_ref    : (1, 1, hid, Kp) bf16  BN-scale-folded weights of (branch, kd)
    shift_ref: (hid, 1)        f32   BN shift
    o_ref    : (1, hid, HWp)   f32   fused conv+BN+ReLU output frame
    acc_ref  : (hid, HWp)      f32
    """
    kd = pl.program_id(1)

    @pl.when(kd == 0)
    def _init():
        acc_ref[...] = jnp.zeros_like(acc_ref)

    # (hid, Kp) @ (Kp, HWp) on the MXU, accumulated in f32.
    acc_ref[...] += jnp.dot(w_ref[0, 0], cols_ref[0],
                            preferred_element_type=jnp.float32)

    @pl.when(kd == pl.num_programs(1) - 1)
    def _finalize():
        y = acc_ref[...] + shift_ref[...]            # BN shift (scale folded into W)
        o_ref[0] = jnp.maximum(y, 0.0).astype(o_ref.dtype)   # ReLU, lane-dense store


# ------------------------------- JAX wrapper ---------------------------------
def slowfast_conv3d_forward(x, w_slow, w_fast, bn_gamma, bn_beta, bn_mean,
                            bn_var, *, stride_d=2, eps=EPS):
    """Forward of SlowFastConv3d (inference semantics). Returns (x_slow, x_fast)."""
    N, Cin, D, H, W = x.shape
    hid, _, Kd, Kh, Kw = w_slow.shape
    assert hid % 8 == 0, "hidden channels must be a multiple of 8 (sublane dim)"

    # padding = (0, 1, 1) on (D, H, W)
    Ho = H + 2 - Kh + 1
    Wo = W + 2 - Kw + 1
    HW = Ho * Wo
    K2d = Cin * Kh * Kw
    Kp = _round_up(K2d, LANE)         # contraction dim, padded with zeros
    HWp = _round_up(HW, LANE)         # lane (store) dim, multiple of 128

    dils = (1, 2)                     # slow / fast depth dilation
    Dos = tuple((D - d * (Kd - 1) - 1) // stride_d + 1 for d in dils)
    assert min(Dos) >= 1

    # ---- shared 2-D im2col (over H, W only), built once for both branches ----
    xp = jnp.pad(x, ((0, 0), (0, 0), (0, 0), (1, 1), (1, 1)))
    taps = [xp[:, :, :, kh:kh + Ho, kw:kw + Wo]          # (N, Cin, D, Ho, Wo)
            for kh in range(Kh) for kw in range(Kw)]
    cols = jnp.stack(taps, axis=2)                       # (N, Cin, Kh*Kw, D, Ho, Wo)
    cols = cols.transpose(0, 3, 1, 2, 4, 5)              # (N, D, Cin, Kh*Kw, Ho, Wo)
    cols = cols.reshape(N * D, K2d, HW).astype(jnp.bfloat16)
    cols = jnp.pad(cols, ((0, 0), (0, Kp - K2d), (0, HWp - HW)))

    # ---- BatchNorm (eval): fold scale into weights, keep shift separate ----
    inv_std = 1.0 / jnp.sqrt(bn_var.astype(jnp.float32) + eps)
    scale = bn_gamma.astype(jnp.float32) * inv_std                         # (hid,)
    shift = (bn_beta.astype(jnp.float32)
             - bn_mean.astype(jnp.float32) * scale).reshape(hid, 1)

    def prep_w(w):
        wk = w.astype(jnp.float32).transpose(2, 0, 1, 3, 4)                # (Kd, hid, Cin, Kh, Kw)
        wk = wk.reshape(Kd, hid, K2d) * scale[None, :, None]               # fold BN scale
        return jnp.pad(wk, ((0, 0), (0, 0), (0, Kp - K2d)))
    w_all = jnp.stack([prep_w(w_slow), prep_w(w_fast)]).astype(jnp.bfloat16)
    # w_all: (2, Kd, hid, Kp)

    # ---- scalar-prefetch tables: output slot -> (flat input frame, branch) ----
    n_slots = [N * do for do in Dos]
    S = sum(n_slots)
    frame_np = np.zeros((S, Kd), np.int32)
    branch_np = np.zeros((S,), np.int32)
    s = 0
    for branch, (Do, dil) in enumerate(zip(Dos, dils)):
        for n in range(N):
            for do in range(Do):
                frame_np[s] = n * D + do * stride_d + dil * np.arange(Kd)
                branch_np[s] = branch
                s += 1
    frame_tbl = jnp.asarray(frame_np)
    branch_tbl = jnp.asarray(branch_np)

    # ---- one fused pallas_call for both branches ----
    grid_spec = pltpu.PrefetchScalarGridSpec(
        num_scalar_prefetch=2,
        grid=(S, Kd),                                    # kd = reduction axis (last)
        in_specs=[
            # 2-D patches of the input frame required by (slot, kd)
            pl.BlockSpec((1, Kp, HWp), lambda m, kd, ft, bt: (ft[m, kd], 0, 0)),
            # BN-scaled weights of (branch, kd)
            pl.BlockSpec((1, 1, hid, Kp), lambda m, kd, ft, bt: (bt[m], kd, 0, 0)),
            # BN shift (resident)
            pl.BlockSpec((hid, 1), lambda m, kd, ft, bt: (0, 0)),
        ],
        out_specs=pl.BlockSpec((1, hid, HWp), lambda m, kd, ft, bt: (m, 0, 0)),
        scratch_shapes=[pltpu.VMEM((hid, HWp), jnp.float32)],
    )
    out = pl.pallas_call(
        _slowfast_kernel,
        out_shape=jax.ShapeDtypeStruct((S, hid, HWp), jnp.float32),
        grid_spec=grid_spec,
        compiler_params=pltpu.CompilerParams(
            dimension_semantics=("parallel", "arbitrary"),
            vmem_limit_bytes=48 * 1024 * 1024),
        cost_estimate=pl.CostEstimate(
            flops=2 * S * Kd * hid * Kp * HWp,
            transcendentals=0,
            bytes_accessed=S * Kd * (Kp * HWp + hid * Kp) * 2 + S * hid * HWp * 4),
    )(frame_tbl, branch_tbl, cols, w_all, shift)

    # ---- drop HW padding, lay out as NCDHW per branch ----
    def unpack(row0, Do):
        y = out[row0:row0 + N * Do]                          # (N*Do, hid, HWp)
        y = y.reshape(N, Do, hid, HWp)[:, :, :, :HW]
        return y.reshape(N, Do, hid, Ho, Wo).transpose(0, 2, 1, 3, 4)

    y_slow = unpack(0, Dos[0])
    y_fast = unpack(n_slots[0], Dos[1])
    # Dropout(p=dropout_3d) is the identity in eval mode.
    # TODO(synk): train-mode Dropout masks and train-mode BatchNorm batch
    # statistics (stochastic / data-dependent) are not reproduced here.
    return y_slow, y_fast


# --------------------------------- main ---------------------------------------
if __name__ == "__main__":
    key = jax.random.PRNGKey(0)
    k1, k2, k3, k4, k5, k6, k7 = jax.random.split(key, 7)

    # Small shapes consistent with the module (Conv3d over video frames).
    N, Cin, D, H, W = 2, 3, 16, 16, 16
    hid = 32                       # hidden_size_3d (scaled down)
    Kd, Kh, Kw = 7, 5, 5           # kernel_size_3d

    x = jax.random.normal(k1, (N, Cin, D, H, W), jnp.float32)

    fan_in = Cin * Kd * Kh * Kw
    bound = 1.0 / (fan_in ** 0.5)
    w_slow = jax.random.uniform(k2, (hid, Cin, Kd, Kh, Kw), jnp.float32, -bound, bound)
    w_fast = jax.random.uniform(k3, (hid, Cin, Kd, Kh, Kw), jnp.float32, -bound, bound)

    bn_gamma = jax.random.uniform(k4, (hid,), jnp.float32, 0.5, 1.5)
    bn_beta = 0.1 * jax.random.normal(k5, (hid,), jnp.float32)
    bn_mean = 0.1 * jax.random.normal(k6, (hid,), jnp.float32)
    bn_var = jax.random.uniform(k7, (hid,), jnp.float32, 0.5, 1.5)

    y_slow, y_fast = slowfast_conv3d_forward(
        x, w_slow, w_fast, bn_gamma, bn_beta, bn_mean, bn_var)
    jax.block_until_ready((y_slow, y_fast))

    # Reference (XLA conv, f32 HIGHEST) for correctness sanity check.
    def _ref(x, w, dil_d):
        conv = jax.lax.conv_general_dilated(
            x, w, window_strides=(2, 1, 1),
            padding=((0, 0), (1, 1), (1, 1)),
            rhs_dilation=(dil_d, 1, 1),
            dimension_numbers=("NCDHW", "OIDHW", "NCDHW"),
            precision=jax.lax.Precision.HIGHEST)
        s = bn_gamma / jnp.sqrt(bn_var + EPS)
        b = bn_beta - bn_mean * s
        bn = conv * s[None, :, None, None, None] + b[None, :, None, None, None]
        return jnp.maximum(bn, 0.0)

    r_slow = _ref(x, w_slow, 1)
    r_fast = _ref(x, w_fast, 2)

    assert y_slow.shape == r_slow.shape, (y_slow.shape, r_slow.shape)
    assert y_fast.shape == r_fast.shape, (y_fast.shape, r_fast.shape)
    # Kernel uses bf16 matmul inputs (f32 accumulation); ~1e-2 relative error
    # vs the f32 HIGHEST reference is expected and covered by 2e-2 tolerances.
    assert jnp.allclose(y_slow, r_slow, atol=2e-2, rtol=2e-2)
    assert jnp.allclose(y_fast, r_fast, atol=2e-2, rtol=2e-2)

    print("KERNEL_OK")
</pallas_src>

<mosaic_0001>
module attributes {stable_mosaic.version = 11 : i64} {
  func.func @_slowfast_kernel(%arg0: i32, %arg1: i32, %arg2: memref<14x7xi32, #tpu.memory_space<smem>>, %arg3: memref<14xi32, #tpu.memory_space<smem>>, %arg4: memref<1x128x256xbf16, #tpu.memory_space<vmem>>, %arg5: memref<1x1x32x128xbf16, #tpu.memory_space<vmem>>, %arg6: memref<32x1xf32, #tpu.memory_space<vmem>>, %arg7: memref<1x32x256xf32, #tpu.memory_space<vmem>>, %arg8: memref<32x256xf32, #tpu.memory_space<vmem>>) attributes {dimension_semantics = [#tpu.dimension_semantics<parallel>, #tpu.dimension_semantics<arbitrary>], iteration_bounds = array<i64: 14, 7>, scalar_prefetch = 2 : i64, scratch_operands = 1 : i64, tpu.core_type = #tpu.core_type<tc>, window_params = [{transform_indices = @transform_0, window_bounds = array<i64: 1, 128, 256>}, {transform_indices = @transform_1, window_bounds = array<i64: 1, 1, 32, 128>}, {pipeline_mode = #tpu.pipeline_mode<synchronous>, transform_indices = @transform_2, window_bounds = array<i64: 32, 1>}, {transform_indices = @transform_3, window_bounds = array<i64: 1, 32, 256>}]} {
    %c0_i32 = arith.constant 0 : i32
    %0 = arith.cmpi eq, %arg1, %c0_i32 : i32
    %1 = arith.extui %0 : i1 to i32
    %c0_i32_0 = arith.constant 0 : i32
    %2 = arith.cmpi ne, %1, %c0_i32_0 : i32
    scf.if %2 {
      %cst_12 = arith.constant 0.000000e+00 : f32
      %14 = vector.broadcast %cst_12 : f32 to vector<32x256xf32>
      %c0_13 = arith.constant 0 : index
      %c0_14 = arith.constant 0 : index
      %15 = vector.load %arg8[%c0_13, %c0_14] : memref<32x256xf32, #tpu.memory_space<vmem>>, vector<32x256xf32>
      tpu.vector_store %arg8[%c0_13, %c0_14], %14 {strides = array<i32>} : memref<32x256xf32, #tpu.memory_space<vmem>>, vector<32x256xf32>,
    } else {
    }
    %c0 = arith.constant 0 : index
    %c0_1 = arith.constant 0 : index
    %3 = vector.load %arg8[%c0, %c0_1] : memref<32x256xf32, #tpu.memory_space<vmem>>, vector<32x256xf32>
    %c0_2 = arith.constant 0 : index
    %c0_3 = arith.constant 0 : index
    %c0_4 = arith.constant 0 : index
    %c0_5 = arith.constant 0 : index
    %4 = vector.load %arg5[%c0_2, %c0_3, %c0_4, %c0_5] : memref<1x1x32x128xbf16, #tpu.memory_space<vmem>>, vector<1x1x32x128xbf16>
    %5 = vector.shape_cast %4 : vector<1x1x32x128xbf16> to vector<32x128xbf16>
    %c0_6 = arith.constant 0 : index
    %c0_7 = arith.constant 0 : index
    %c0_8 = arith.constant 0 : index
    %6 = vector.load %arg4[%c0_6, %c0_7, %c0_8] : memref<1x128x256xbf16, #tpu.memory_space<vmem>>, vector<1x128x256xbf16>
    %7 = vector.shape_cast %6 : vector<1x128x256xbf16> to vector<128x256xbf16>
    %cst = arith.constant dense<0.000000e+00> : vector<32x256xf32>
    %8 = tpu.matmul %5, %7, %cst {dimension_numbers = #tpu.dot_dimension_numbers<[1], [0], [0], [1], [0, 0, 1, 1], [], []>} : vector<32x128xbf16>, vector<128x256xbf16>, vector<32x256xf32> -> vector<32x256xf32>
    %9 = arith.addf %3, %8 : vector<32x256xf32>
    %c0_9 = arith.constant 0 : index
    %c0_10 = arith.constant 0 : index
    %10 = vector.load %arg8[%c0_9, %c0_10] : memref<32x256xf32, #tpu.memory_space<vmem>>, vector<32x256xf32>
    tpu.vector_store %arg8[%c0_9, %c0_10], %9 {strides = array<i32>} : memref<32x256xf32, #tpu.memory_space<vmem>>, vector<32x256xf32>,
    %c6_i32 = arith.constant 6 : i32
    %11 = arith.cmpi eq, %arg1, %c6_i32 : i32
    %12 = arith.extui %11 : i1 to i32
    %c0_i32_11 = arith.constant 0 : i32
    %13 = arith.cmpi ne, %12, %c0_i32_11 : i32
    scf.if %13 {
      %c0_12 = arith.constant 0 : index
      %c0_13 = arith.constant 0 : index
      %14 = vector.load %arg8[%c0_12, %c0_13] : memref<32x256xf32, #tpu.memory_space<vmem>>, vector<32x256xf32>
      %c0_14 = arith.constant 0 : index
      %c0_15 = arith.constant 0 : index
      %15 = vector.load %arg6[%c0_14, %c0_15] : memref<32x1xf32, #tpu.memory_space<vmem>>, vector<32x1xf32>
      %16 = vector.broadcast %15 : vector<32x1xf32> to vector<32x256xf32>
      %17 = arith.addf %14, %16 : vector<32x256xf32>
      %cst_16 = arith.constant 0.000000e+00 : f32
      %18 = vector.broadcast %cst_16 : f32 to vector<32x256xf32>
      %19 = arith.maximumf %17, %18 : vector<32x256xf32>
      %c0_17 = arith.constant 0 : index
      %c0_18 = arith.constant 0 : index
      %c0_19 = arith.constant 0 : index
      %20 = vector.load %arg7[%c0_17, %c0_18, %c0_19] : memref<1x32x256xf32, #tpu.memory_space<vmem>>, vector<1x32x256xf32>
      %21 = vector.shape_cast %20 : vector<1x32x256xf32> to vector<32x256xf32>
      %22 = vector.shape_cast %19 : vector<32x256xf32> to vector<1x32x256xf32>
      tpu.vector_store %arg7[%c0_17, %c0_18, %c0_19], %22 {strides = array<i32>} : memref<1x32x256xf32, #tpu.memory_space<vmem>>, vector<1x32x256xf32>,
    } else {
    }
    return
  }
  func.func @transform_0(%arg0: i32, %arg1: i32, %arg2: memref<14x7xi32, #tpu.memory_space<smem>>, %arg3: memref<14xi32, #tpu.memory_space<smem>>) -> (i32, i32, i32) {
    %0 = arith.index_cast %arg0 : i32 to index
    %1 = arith.index_cast %arg1 : i32 to index
    %2 = memref.load %arg2[%0, %1] : memref<14x7xi32, #tpu.memory_space<smem>>
    %c0_i32 = arith.constant 0 : i32
    %c0_i32_0 = arith.constant 0 : i32
    %c0_i32_1 = arith.constant 0 : i32
    return %2, %c0_i32, %c0_i32_0 : i32, i32, i32
  }
  func.func @transform_1(%arg0: i32, %arg1: i32, %arg2: memref<14x7xi32, #tpu.memory_space<smem>>, %arg3: memref<14xi32, #tpu.memory_space<smem>>) -> (i32, i32, i32, i32) {
    %0 = arith.index_cast %arg0 : i32 to index
    %1 = memref.load %arg3[%0] : memref<14xi32, #tpu.memory_space<smem>>
    %c0_i32 = arith.constant 0 : i32
    %c0_i32_0 = arith.constant 0 : i32
    %c0_i32_1 = arith.constant 0 : i32
    return %1, %arg1, %c0_i32, %c0_i32_0 : i32, i32, i32, i32
  }
  func.func @transform_2(%arg0: i32, %arg1: i32, %arg2: memref<14x7xi32, #tpu.memory_space<smem>>, %arg3: memref<14xi32, #tpu.memory_space<smem>>) -> (i32, i32) {
    %c0_i32 = arith.constant 0 : i32
    %c0_i32_0 = arith.constant 0 : i32
    %c0_i32_1 = arith.constant 0 : i32
    return %c0_i32, %c0_i32_0 : i32, i32
  }
  func.func @transform_3(%arg0: i32, %arg1: i32, %arg2: memref<14x7xi32, #tpu.memory_space<smem>>, %arg3: memref<14xi32, #tpu.memory_space<smem>>) -> (i32, i32, i32) {
    %c0_i32 = arith.constant 0 : i32
    %c0_i32_0 = arith.constant 0 : i32
    %c0_i32_1 = arith.constant 0 : i32
    return %arg0, %c0_i32, %c0_i32_0 : i32, i32, i32
  }
}

</mosaic_0001>

<bundles_post_ra>
// kernel: tpu_custom_call.1
= control target key start
LH: loop header
LB: loop body
LE: loop exit
PB: predicated region body
PF: predicated region fallthrough
CT: control target
= control target key end

     0   :  { %s1633_s0 = inlined_call_operand.vmem [shape: s32[14,7], index: 0, kind: input, shape index: {}]   ;;  %s1634_s2 = inlined_call_operand.hbm [shape: bf16[32,128,256], index: 2, kind: input, shape index: {}]   ;;  %s1635_s3 = inlined_call_operand.hbm [shape: bf16[2,7,32,128], index: 3, kind: input, shape index: {}]   ;;  %s1636_s4 = inlined_call_operand.vmem [shape: f32[32,1], index: 4, kind: input, shape index: {}]   ;;  %s1637_s5 = inlined_call_operand.hbm [shape: f32[14,32,256], index: 5, kind: output, shape index: {}]   ;;  %s1638_s1 = inlined_call_operand.hbm [shape: s32[14], index: 1, kind: input, shape index: {}]  }
   0x1   :  { %1650 = sst [smem:[#allocation29_spill]] %s1634_s2  ;;  %s10_s20 = sshll.u32 %s1633_s0, 4  ;;  %s11_s20 = int_to_ptr.vmem [resolvable:$true] %s10_s20 }
   0x2   :  { %1651 = sst [smem:[#allocation30_spill]] %s1637_s5  ;;  %s916_s21 = scalar_lea.vmem %s11_s20, 256 }
   0x3   :  { %p917_p0 = scmp.ne.s32.totalorder %s11_s20, %s916_s21  ;;  %p921_p1 = scmp.lt.s32.totalorder %s11_s20, %s11_s20 }
   0x4   :  { %p922_p2 = scmp.lt.s32.totalorder %s916_s21, %s916_s21 }
   0x6   :  { %p923_p3 = por %p922_p2, %p921_p1 }
   0x8   :  { %p924_p4 = pnand %p923_p3, %p917_p0 }
   0xa   :  { %927 = shalt.err (!%p924_p4)  }
   0xb   :  { %s1152_s22 = smov [#allocation4]   ;;  %s928_s25 = scalar_lea.hbm %s1638_s1, 16 }
   0xc   :  { %13 = dma.vmem_to_smem %s11_s20, 256, %s1152_s22, [#allocation3] }
   0xd   :  { %p929_p5 = scmp.ne.s32.totalorder %s1638_s1, %s928_s25  ;;  %p932_p6 = scmp.lt.u32.totalorder %s928_s25, %s1638_s1 }
   0xf   :  { %p934_p7 = pnand %p932_p6, %p929_p5 }
  0x11   :  { %937 = shalt.err (!%p934_p7)  }
  0x12   :  { %s1153_s29 = smov [#allocation5]  }
  0x13   :  { %15 = dma.hbm_to_smem %s1638_s1, 16, %s1153_s29, [#allocation3] }
  0x14   :  { %1082 = dma.done.wait [#allocation3], 272 }
  0x15   :  { %1083 = vsyncadd [#allocation3], 4294967024 }
  0x16   :  { %17 = sfence }
  0x17   :  { %18 = vsyncpa [#allocation7], 0 }
  0x18   :  { %20 = vsyncpa [#allocation7 + $0x1], 0 }
  0x19   :  { %21 = vsyncpa [#allocation10], 0 }
  0x1a   :  { %23 = vsyncpa [#allocation10 + $0x1], 0 }
  0x1b   :  { %24 = vsyncpa [#allocation8], 0 }
  0x1c   :  { %26 = vsyncpa [#allocation8 + $0x1], 0  ;;  %s1211_s7 = smov 0   ;;  %s1213_s8 = smov 0  }
  0x1d   :  { %s1215_s9 = smov 0   ;;  %s1217_s10 = smov 0  }
  0x1e   :  { %s1219_s11 = smov 0   ;;  %s1221_s1 = smov 0  }
  0x1f   :  { %s1223_s12 = smov 0   ;;  %s1225_s13 = smov 0  }
  0x20   :  { %s1227_s14 = smov 0   ;;  %s1229_s15 = smov 0  }
  0x21   :  { %s1231_s16 = smov 0   ;;  %s1233_s17 = smov 0  }
  0x22   :  { %s1235_s18 = smov 0   ;;  %s1237_s19 = smov 0  }
  0x23 LB: > { %1652 = sst [smem:[#allocation20_spill]] %s1098_s7  ;;  %s677_s20 = sadd.s32 4294967295, %s1150_s19   ;;  %s1150_s19 = sphi %s1237_s19, %s32_s19   ;;  %s1146_s18 = sphi %s1235_s18, %s1702_s18   ;;  %s1142_s17 = sphi %s1233_s17, %s1701_s17   ;;  %s1138_s16 = sphi %s1231_s16, %s1700_s16   ;;  %s1134_s15 = sphi %s1229_s15, %s1699_s15   ;;  %s1130_s14 = sphi %s1227_s14, %s1689_s14   ;;  %s1126_s13 = sphi %s1225_s13, %s1698_s13   ;;  %s1122_s12 = sphi %s1223_s12, %s1697_s12   ;;  %s1118_s1 = sphi %s1221_s1, %s1696_s1   ;;  %s1114_s11 = sphi %s1219_s11, %s1695_s11   ;;  %s1110_s10 = sphi %s1217_s10, %s1694_s10   ;;  %s1106_s9 = sphi %s1215_s9, %s1687_s9   ;;  %s1102_s8 = sphi %s1213_s8, %s1693_s8   ;;  %s1098_s7 = sphi %s1211_s7, %s1692_s7  }
  0x24   : > { %1653 = sst [smem:[#allocation21_spill]] %s1106_s9  ;;  %s41_s22 = sadd.s32 1, %s1142_s17 }
  0x25   : > { %1654 = sst [smem:[#allocation22_spill]] %s1130_s14  ;;  %s44_s23 = sadd.s32 1, %s1146_s18 }
  0x26   : > { %1655 = sst [smem:[#allocation23_spill]] %s1138_s16  ;;  %p42_p8 = scmp.ge.s32.totalorder %s41_s22, 7 }
  0x27   : > { %s48_s24 = sshra.s32 %s1142_s17, 7  ;;  %s53_s26 = sand.u32 127, %s1142_s17 }
  0x28   : > { %s50_s25 = sadd.s32 %s1146_s18, %s48_s24  ;;  %s1704_s22 = smov (%p42_p8, %s41_s22), 0 }
  0x29   : > { %1656 = sst [smem:[#allocation24_spill]] %s1704_s22  ;;  %s1706_s23 = smov (!%p42_p8, %s44_s23), %s1146_s18 }
  0x2a   : > { %s679_s27 = sshll.u32 %s50_s25, 7  ;;  %s56_s28 = sshra.s32 %s1704_s22, 7 }
  0x2b   : > { %p46_p9 = scmp.ge.s32.totalorder %s1706_s23, 14  ;;  %s1292_s0 = sadd.s32 %s679_s27, %s53_s26 }
  0x2c   : > { %s55_s29 = sld [smem:[#allocation4 + %s1292_s0]]  ;;  %s61_s30 = sand.u32 127, %s1704_s22 }
  0x2d   : > { %s1708_s23 = smov (%p46_p9, %s1706_s23), 0  ;;  %s67_s6 = sadd.s32 1, %s1130_s14 }
  0x2e   : > { %1657 = sst [smem:[#allocation25_spill]] %s1708_s23  ;;  %p74_p10 = scmp.ne.s32.totalorder %s1130_s14, %s1126_s13 }
  0x2f   : > { %s58_s24 = sadd.s32 %s56_s28, %s1708_s23  ;;  %p1645_p11 = scmp.eq.s32.totalorder %s1150_s19, 0 }
  0x30   : > { %s680_s25 = sshll.u32 %s58_s24, 7  ;;  %p80_p12 = scmp.ne.s32.totalorder %s1126_s13, %s1122_s12 }
  0x31   : > { %s62_s26 = sadd.s32 %s680_s25, %s61_s30  ;;  %p1307_p13 = por %p1645_p11, %p74_p10 }
  0x32   : > { %s63_s21 = sld [smem:[#allocation4 + %s62_s26]]  ;;  %p1313_p0 = scmp.eq.s32.totalorder %s677_s20, 0 }
  0x33   : > { %s141_s28 = ssub.s32 %s1146_s18, %s1708_s23  ;;  %s144_s12 = sadd.s32 1, %s1106_s9 }
  0x34   : > { %p1322_p1 = por %p1313_p0, %p80_p12  ;;  %p142_p2 = scmp.eq.s32.totalorder %s141_s28, 0 }
  0x35   : > { %p154_p3 = scmp.ne.s32.totalorder %s1106_s9, %s1102_s8  ;;  %p155_p4 = scmp.eq.s32.totalorder %s677_s20, 97 }
  0x36   : > { %s1660_s30 = scalar_select %p1322_p1, 1, 0 }
  0x37   : > { %s1331_s24 = scalar_select %p142_p2, %s1106_s9, %s144_s12  }
  0x38   : > { %p1333_p5 = por %p155_p4, %p154_p3  ;;  %p160_p6 = scmp.ne.s32.totalorder %s1102_s8, %s1098_s7 }
  0x39   : > { %1661 = sst [smem:[#allocation26_spill]] %s1331_s24  ;;  %s64_s26 = ssub.s32 %s55_s29, %s63_s21 }
  0x3a   : > { %s1662_s25 = scalar_select %p1333_p5, 1, 0 }
  0x3b   : > { %s1663_s16 = sadd.s32 4294967294, %s1150_s19   ;;  %p65_p8 = scmp.eq.s32.totalorder %s64_s26, 0 }
  0x3c   : > { %p161_p7 = scmp.eq.s32.totalorder %s1663_s16, 97  ;;  %p1644_p10 = scmp.lt.s32.totalorder %s1150_s19, 98 }
  0x3d   : > { %s1347_s20 = scalar_select %p65_p8, %s1130_s14, %s67_s6  }
  0x3e   : > { %p1341_p9 = por %p161_p7, %p160_p6  ;;  %s184_s12 = sand.u32 1, %s1130_s14  }
  0x3f   : > { %1666 = sst [smem:[#allocation28_spill]] %s1347_s20  ;;  %p1354_p12 = pnand %p1644_p10, %p1307_p13 }
  0x40   : > { %s1664_s28 = scalar_select %p1341_p9, 1, 0 }
  0x41   : > { %s683_s16 = sshll.u32 %s184_s12, 7  ;;  %s1710_s0 = smov (!%p1307_p13, %s1292_s0), 0 }
  0x42   : > { %1665 = sst [smem:[#allocation27_spill]] %s1664_s28  ;;  %s1714_s0 = smov (!%p1644_p10, %s1710_s0), 0 }
  0x43   : > { %s738_s21 = scalar_select %p1307_p13, [#allocation4], [#allocation12] }
  0x44   : > { %s188_s29 = scalar_lea.vmem [#allocation6], %s683_s16  ;;  %p690_p2 = scmp.ge.s32.totalorder %s1150_s19, 1 }
  0x45   : > { %s1712_s21 = smov (!%p1644_p10, %s738_s21), [#allocation14]  ;;  %s203_s6 = sshll.u32 %s188_s29, 4  ;;  %s1367_s6 = int_to_ptr.vmem [resolvable:$true] %s203_s6 }
  0x46   : > { %s196_s26 = sld [smem:[%s1712_s21 + %s1714_s0]]  ;;  %p235_p3 = scmp.lt.s32.totalorder %s1150_s19, 99 }
  0x47   : > { %s1376_s27 = sld [smem:[#allocation5 + %s1146_s18]]  ;;  %s1386_s16 = scalar_lea.sflag [#allocation7], %s184_s12 }
  0x48   : > { %p1371_p4 = pnand %p690_p2, %p235_p3  ;;  %s1669_s2 = sld [smem:[#allocation29_spill]] }
  0x49   : > { %s1384_s0 = sld [smem:[#allocation5 + %s1708_s23]]  ;;  %p940_p6 = pneg %p1354_p12 }
  0x4a   : > { %s1668_s20 = scalar_select %p1371_p4, 1, 0 }
  0x4c   : > { %s719_s14 = sshll.u32 %s196_s26, 11 }
  0x4e   : > { %s1381_s7 = scalar_lea.hbm %s1669_s2, %s719_s14  ;;  %s943_s14 = scalar_lea.hbm %s1669_s2, 65536 }
  0x4f   : > { %s938_s21 = scalar_lea.hbm %s1381_s7, 2048  ;;  %p944_p2 = scmp.lt.u32.totalorder %s1381_s7, %s1669_s2 }
  0x50   : > { %p939_p13 = scmp.ne.s32.totalorder %s1381_s7, %s938_s21  ;;  %p945_p3 = scmp.lt.u32.totalorder %s943_s14, %s938_s21 }
  0x51   : > { %p947_p11 = scmp.lt.u32.totalorder %s938_s21, %s1381_s7 }
  0x52   : > { %p941_p7 = pnand %p940_p6, %p939_p13  ;;  %p946_p10 = por %p945_p3, %p944_p2 }
  0x54   : > { %p942_p8 = pneg %p941_p7  ;;  %p948_p9 = por %p947_p11, %p946_p10 }
  0x56   : > { %p949_p5 = pnand %p948_p9, %p942_p8 }
  0x58   : > { %952 = shalt.err (!%p949_p5)
}
  0x59   : > { %s953_s12 = scalar_lea.vmem %s1367_s6, 2048  ;;  %s1154_s29 = smov [#allocation6]  }
  0x5a   : > { %p954_p13 = scmp.ne.s32.totalorder %s1367_s6, %s953_s12  ;;  %s958_s9 = sshll.u32 %s1154_s29, 4  ;;  %s959_s9 = int_to_ptr.vmem [resolvable:$false] %s958_s9 }
  0x5b   : > { %s960_s28 = scalar_lea.vmem %s959_s9, 4096  ;;  %p961_p4 = scmp.lt.s32.totalorder %s1367_s6, %s959_s9 }
  0x5c   : > { %p956_p7 = pnand %p954_p13, %p940_p6  ;;  %p962_p2 = scmp.lt.s32.totalorder %s960_s28, %s953_s12 }
  0x5e   : > { %p957_p1 = pneg %p956_p7  ;;  %p963_p3 = por %p962_p2, %p961_p4 }
  0x60   : > { %p964_p11 = pnand %p963_p3, %p957_p1 }
  0x62   : > { %967 = shalt.err (!%p964_p11)
}
  0x63   : > { %s1155_s21 = smov 128   ;;  %s1156_s14 = smov 8  }
  0x64   : > { %753 = dma.hbm_to_vmem [thread:$0]  (!%p1354_p12), %s1381_s7, 2048, %s1367_s6, %s1386_s16, %s1155_s21, %s1155_s21, %s1156_s14  }
  0x65   : > { %p104_p1 = scmp.ne.s32.totalorder %s1118_s1, %s1114_s11  ;;  %p110_p5 = scmp.ne.s32.totalorder %s1114_s11, %s1110_s10 }
  0x66   : > { %s93_s26 = ssub.s32 %s1142_s17, %s1704_s22  ;;  %s213_s12 = sand.u32 1, %s1118_s1  }
  0x67   : > { %p1670_p9 = scmp.eq.s32.totalorder %s1150_s19, 0  ;;  %p1425_p4 = por %p110_p5, %p1313_p0 }
  0x68   : > { %s92_s9 = ssub.s32 %s1376_s27, %s1384_s0  ;;  %s97_s2 = sadd.s32 1, %s1118_s1 }
  0x69   : > { %p106_p10 = por %p104_p1, %p1670_p9  ;;  %s94_s28 = sor.u32 %s93_s26, %s92_s9 }
  0x6a   : > { %p95_p6 = scmp.eq.s32.totalorder %s94_s28, 0  ;;  %s687_s24 = sshll.u32 %s213_s12, 4 }
  0x6b   : > { %s741_s7 = scalar_select %p106_p10, [#allocation5], [#allocation13] }
  0x6c   : > { %s1433_s6 = scalar_select %p95_p6, %s1118_s1, %s97_s2  }
  0x6d   : > { %s742_s16 = scalar_select %p106_p10, %s1146_s18, 0 }
  0x6e   : > { %p1672_p12 = scmp.lt.s32.totalorder %s1150_s19, 98  ;;  %s217_s27 = scalar_lea.vmem [#allocation9], %s687_s24 }
  0x6f   : > { %s227_s0 = sshll.u32 %s217_s27, 4  ;;  %s688_s21 = sshll.u32 %s1142_s17, 2  ;;  %s1447_s0 = int_to_ptr.vmem [resolvable:$true] %s227_s0 }
  0x70   : > { %s1716_s7 = smov (!%p1672_p12, %s741_s7), [#allocation15]  ;;  %p1673_p8 = pmov %p1672_p12 }
  0x71   : > { %s1454_s22 = scalar_lea.sflag [#allocation10], %s213_s12 }
  0x72   : > { %s1718_s16 = smov (!%p1673_p8, %s742_s16), 0  ;;  %p1674_p13 = pmov %p1673_p8 }
  0x73   : > { %s218_s10 = sld [smem:[%s1716_s7 + %s1718_s16]] }
  0x74   : > { %p1442_p7 = pnand %p1674_p13, %p106_p10 }
  0x76   : > { %p970_p2 = pneg %p1442_p7 }
  0x79   : > { %s737_s14 = smul.u32 28, %s218_s10  ;;  %s973_s10 = scalar_lea.hbm %s1635_s3, 3584 }
  0x7b   : > { %s224_s2 = sadd.s32 %s737_s14, %s688_s21 }
  0x7c   : > { %s689_s26 = sshll.u32 %s224_s2, 6 }
  0x7d   : > { %s1452_s23 = scalar_lea.hbm %s1635_s3, %s689_s26 }
  0x7e   : > { %s968_s7 = scalar_lea.hbm %s1452_s23, 256  ;;  %p974_p1 = scmp.lt.u32.totalorder %s1452_s23, %s1635_s3 }
  0x7f   : > { %p969_p0 = scmp.ne.s32.totalorder %s1452_s23, %s968_s7  ;;  %p975_p5 = scmp.lt.u32.totalorder %s973_s10, %s968_s7 }
  0x80   : > { %p977_p10 = scmp.lt.u32.totalorder %s968_s7, %s1452_s23 }
  0x81   : > { %p971_p3 = pnand %p970_p2, %p969_p0  ;;  %p976_p9 = por %p975_p5, %p974_p1 }
  0x83   : > { %p972_p11 = pneg %p971_p3  ;;  %p978_p6 = por %p977_p10, %p976_p9 }
  0x85   : > { %p979_p12 = pnand %p978_p6, %p972_p11 }
  0x87   : > { %982 = shalt.err (!%p979_p12)
}
  0x88   : > { %s983_s12 = scalar_lea.vmem %s1447_s0, 256  ;;  %s1157_s14 = smov [#allocation9]  }
  0x89   : > { %p984_p8 = scmp.ne.s32.totalorder %s1447_s0, %s983_s12  ;;  %s988_s2 = sshll.u32 %s1157_s14, 4  ;;  %s989_s2 = int_to_ptr.vmem [resolvable:$false] %s988_s2 }
  0x8a   : > { %s990_s26 = scalar_lea.vmem %s989_s2, 512  ;;  %p991_p3 = scmp.lt.s32.totalorder %s1447_s0, %s989_s2 }
  0x8b   : > { %p986_p13 = pnand %p984_p8, %p970_p2  ;;  %p992_p1 = scmp.lt.s32.totalorder %s990_s26, %s983_s12 }
  0x8d   : > { %p987_p0 = pneg %p986_p13  ;;  %p993_p5 = por %p992_p1, %p991_p3 }
  0x8f   : > { %p994_p9 = pnand %p993_p5, %p987_p0 }
  0x91   : > { %997 = shalt.err (!%p994_p9)
}
  0x92   : > { %s1158_s9 = smov 64   ;;  %s1159_s28 = smov 4  }
  0x93   : > { %758 = dma.hbm_to_vmem [thread:$0]  (!%p1442_p7), %s1452_s23, 256, %s1447_s0, %s1454_s22, %s1158_s9, %s1158_s9, %s1159_s28  }
  0x94   : > { %p1676_p2 = scmp.ne.s32.totalorder %s1668_s20, 0 }
  0x95   : > { %s241_s7 = sand.u32 (!%p1676_p2), 1, %s1126_s13   ;;  %p1677_p11 = scmp.ne.s32.totalorder (!%p1676_p2), %s1660_s30, 0 }
  0x96   : > { %239 = sbr.rel (%p1676_p2) target bundleno = 464 (0x1d0), region = 32  ;;  %s691_s24 = sshll.u32 (!%p1676_p2), %s241_s7, 7 }
  0x97   : > { %s242_s16 = scalar_lea.sflag (!%p1676_p2), [#allocation7], %s241_s7  ;;  %s1485_s10 = scalar_lea.vmem (!%p1676_p2), [#allocation6], %s691_s24 }
  0x9d   : > { %1085 = dma.done.wait (%p1677_p11), %s242_s16, 2048  }
  0x9e   : > { %1087 = vsyncadd (%p1677_p11), %s242_s16, 4294965248  ;;  %s250_s27 = sand.u32 1, %s1114_s11  }
  0x9f   : > { %s1492_s5 = sshll.u32 %s250_s27, 4  ;;  %s251_s22 = scalar_lea.sflag [#allocation10], %s250_s27 }
  0xa0   : > { %s254_s23 = scalar_lea.vmem [#allocation9], %s1492_s5 }
  0xa1   : > { %1089 = dma.done.wait (%p1425_p4), %s251_s22, 256  }
  0xa2   : > { %1091 = vsyncadd (%p1425_p4), %s251_s22, 4294967040  ;;  %s279_s20 = sand.u32 1, %s1102_s8   ;;  %p694_p7 = scmp.ne.s32.totalorder %s1134_s15, 0 }
  0xa3   : > { %s693_s0 = sshll.u32 %s279_s20, 6  ;;  %v1160_v0 = vmov (!%p694_p7), 0.0  }
  0xa4   : > { %s1502_s30 = scalar_lea.vmem [#allocation11], %s693_s0  ;;  %295 = sbr.rel (%p694_p7) target bundleno = 171 (0xab), region = 44  ;;  %296 = vst [vmem:[#allocation2] sm:$0xff] (!%p694_p7), %v1160_v0  ;;  %297 = vst [vmem:[#allocation2 + $0x8] sm:$0xff] (!%p694_p7), %v1160_v0 }
  0xa5   : > { %298 = vst [vmem:[#allocation2 + $0x10] sm:$0xff] (!%p694_p7), %v1160_v0  ;;  %299 = vst [vmem:[#allocation2 + $0x18] sm:$0xff] (!%p694_p7), %v1160_v0 }
  0xa6   : > { %300 = vst [vmem:[#allocation2 + $0x20] sm:$0xff] (!%p694_p7), %v1160_v0  ;;  %301 = vst [vmem:[#allocation2 + $0x28] sm:$0xff] (!%p694_p7), %v1160_v0 }
  0xa7   : > { %302 = vst [vmem:[#allocation2 + $0x30] sm:$0xff] (!%p694_p7), %v1160_v0  ;;  %303 = vst [vmem:[#allocation2 + $0x38] sm:$0xff] (!%p694_p7), %v1160_v0 }
  0xab PF: > { %v888_v1 = vld [vmem:[%s1485_s10 + $0x4] ss:$8 sps:$4 sm:$0xff]   ;;  %v890_v2 = vld [vmem:[%s1485_s10] ss:$8 sps:$4 sm:$0xff]   ;;  %v1161_v3 = vmov 0   ;;  %p713_p4 = scmp.ne.s32.totalorder %s1134_s15, 6 }
  0xac   : > { %456 = vmatprep.mubr.bf16.mxu0 %v1161_v3  ;;  %466 = vmatprep.mubr.bf16.mxu1 %v1161_v3  ;;  %v891_v4 = vld [vmem:[%s1485_s10 + $0x14] ss:$8 sps:$4 sm:$0xff]   ;;  %v893_v5 = vld [vmem:[%s1485_s10 + $0x10] ss:$8 sps:$4 sm:$0xff]   ;;  %v894_v6 = vld [vmem:[%s1485_s10 + $0x24] ss:$8 sps:$4 sm:$0xff]  }
  0xad   : > { %424 = vmatprep.subr.bf16.mxu0 %v888_v1  ;;  %721 = vmatprep.subr.bf16.mxu1 %v888_v1  ;;  %v896_v7 = vld [vmem:[%s1485_s10 + $0x20] ss:$8 sps:$4 sm:$0xff]   ;;  %v897_v8 = vld [vmem:[%s1485_s10 + $0x34] ss:$8 sps:$4 sm:$0xff]   ;;  %v899_v9 = vld [vmem:[%s1485_s10 + $0x30] ss:$8 sps:$4 sm:$0xff]  }
  0xae   : > { %425 = vmatpush1.bf16.msra.mxu0 %v890_v2  ;;  %729 = vmatpush1.bf16.msra.mxu1 %v890_v2  ;;  %v900_v10 = vld [vmem:[%s1485_s10 + $0x44] ss:$8 sps:$4 sm:$0xff]   ;;  %v902_v11 = vld [vmem:[%s1485_s10 + $0x40] ss:$8 sps:$4 sm:$0xff]   ;;  %v903_v12 = vld [vmem:[%s1485_s10 + $0x54] ss:$8 sps:$4 sm:$0xff]  }
  0xaf   : > { %426 = vmatprep.subr.bf16.mxu0 %v891_v4  ;;  %722 = vmatprep.subr.bf16.mxu1 %v891_v4  ;;  %v905_v13 = vld [vmem:[%s1485_s10 + $0x50] ss:$8 sps:$4 sm:$0xff]   ;;  %v906_v14 = vld [vmem:[%s1485_s10 + $0x64] ss:$8 sps:$4 sm:$0xff]   ;;  %v908_v15 = vld [vmem:[%s1485_s10 + $0x60] ss:$8 sps:$4 sm:$0xff]  }
  0xb0   : > { %v909_v16 = vld [vmem:[%s1485_s10 + $0x74] ss:$8 sps:$4 sm:$0xff]   ;;  %v911_v17 = vld [vmem:[%s1485_s10 + $0x70] ss:$8 sps:$4 sm:$0xff]   ;;  %v304_v20 = vld [vmem:[#allocation2] sm:$0xff]  ;;  %v1162_v46 = vmov (!%p713_p4), 0  }
  0xb1   : > { %v912_v18 = vld [vmem:[%s254_s23] sm:$0xff]   ;;  %v913_v19 = vld [vmem:[%s254_s23 + $0x8] sm:$0xff]   ;;  %915 = vset.pattern.permute.xlu1 (!%p713_p4), %v1162_v46  ;;  %914 = vset.pattern.permute.xlu0 (!%p713_p4), %v1162_v46 }
  0xb2   : > { %427 = vmatpush1.bf16.msra.mxu0 %v893_v5  ;;  %730 = vmatpush1.bf16.msra.mxu1 %v893_v5  ;;  %v308_v21 = vld [vmem:[#allocation2 + $0x20] sm:$0xff]  ;;  %v305_v22 = vld [vmem:[#allocation2 + $0x8] sm:$0xff]  ;;  %v306_v26 = vld [vmem:[#allocation2 + $0x10] sm:$0xff] }
  0xb3   : > { %428 = vmatprep.subr.bf16.mxu0 %v894_v6  ;;  %723 = vmatprep.subr.bf16.mxu1 %v894_v6  ;;  %v309_v23 = vld [vmem:[#allocation2 + $0x28] sm:$0xff]  ;;  %v310_v27 = vld [vmem:[#allocation2 + $0x30] sm:$0xff]  ;;  %v307_v32 = vld [vmem:[#allocation2 + $0x18] sm:$0xff] }
  0xb4   : > { %v311_v33 = vld [vmem:[#allocation2 + $0x38] sm:$0xff]  ;;  %v507_v44 = vld [vmem:[%s1636_s4 + $0x10] sm:$0xff] (!%p713_p4)  ;;  %v505_v45 = vld [vmem:[%s1636_s4] sm:$0xff] (!%p713_p4) }
  0xb5   : > { %521 = vperm.xlu1 (!%p713_p4), %915, %v507_v44   ;;  %511 = vperm.xlu0 (!%p713_p4), %914, %v505_v45   ;;  %v508_v47 = vld [vmem:[%s1636_s4 + $0x18] sm:$0xff] (!%p713_p4)  ;;  %v506_v48 = vld [vmem:[%s1636_s4 + $0x8] sm:$0xff] (!%p713_p4) }
  0xb6   : > { %429 = vmatpush1.bf16.msra.mxu0 %v896_v7  ;;  %731 = vmatpush1.bf16.msra.mxu1 %v896_v7 }
  0xb7   : > { %430 = vmatprep.subr.bf16.mxu0 %v897_v8  ;;  %724 = vmatprep.subr.bf16.mxu1 %v897_v8 }
  0xb9   : > { %526 = vperm.xlu1 (!%p713_p4), %915, %v508_v47   ;;  %516 = vperm.xlu0 (!%p713_p4), %914, %v506_v48  }
  0xba   : > { %431 = vmatpush1.bf16.msra.mxu0 %v899_v9  ;;  %732 = vmatpush1.bf16.msra.mxu1 %v899_v9 }
  0xbb   : > { %432 = vmatprep.subr.bf16.mxu0 %v900_v10  ;;  %725 = vmatprep.subr.bf16.mxu1 %v900_v10 }
  0xbe   : > { %433 = vmatpush1.bf16.msra.mxu0 %v902_v11  ;;  %733 = vmatpush1.bf16.msra.mxu1 %v902_v11 }
  0xbf   : > { %434 = vmatprep.subr.bf16.mxu0 %v903_v12  ;;  %726 = vmatprep.subr.bf16.mxu1 %v903_v12 }
  0xc2   : > { %435 = vmatpush1.bf16.msra.mxu0 %v905_v13  ;;  %734 = vmatpush1.bf16.msra.mxu1 %v905_v13 }
  0xc3   : > { %436 = vmatprep.subr.bf16.mxu0 %v906_v14  ;;  %727 = vmatprep.subr.bf16.mxu1 %v906_v14 }
  0xc6   : > { %437 = vmatpush1.bf16.msra.mxu0 %v908_v15  ;;  %735 = vmatpush1.bf16.msra.mxu1 %v908_v15 }
  0xc7   : > { %438 = vmatprep.subr.bf16.mxu0 %v909_v16  ;;  %728 = vmatprep.subr.bf16.mxu1 %v909_v16 }
  0xca   : > { %439 = vmatpush1.bf16.msra.mxu0 %v911_v17  ;;  %736 = vmatpush1.bf16.msra.mxu1 %v911_v17 }
  0xcd   : > { %457 = vmatmul.mubr.bf16.vlgmr.msra.gmra.mrb[0].mxu0 %v912_v18  ;;  %467 = vmatmul.mubr.bf16.vlgmr.msra.gmra.mrb[0].mxu1 %v913_v19 }
 0x134   : > { %v522_v53 = vpop.permute.xlu1 (!%p713_p4), %521  ;;  %v512_v54 = vpop.permute.xlu0 (!%p713_p4), %511 }
 0x138   : > { %v527_v3 = vpop.permute.xlu1 (!%p713_p4), %526  ;;  %v517_v4 = vpop.permute.xlu0 (!%p713_p4), %516 }
 0x1a0   : > { %v458_v24 = vpop.f32.mrb[0].mxu0  ;;  %v468_v25 = vpop.f32.mrb[0].mxu1  ;;  %496 = sbr.rel (%p713_p4) target bundleno = 436 (0x1b4), region = 48 }
 0x1a1   : > { %v477_v28 = vadd.f32 %v458_v24, %v304_v20  ;;  %v481_v29 = vadd.f32 %v468_v25, %v308_v21  ;;  %v460_v30 = vpop.f32.mrb[1].mxu0  ;;  %v470_v31 = vpop.f32.mrb[1].mxu1 }
 0x1a2   : > { %v478_v34 = vadd.f32 %v460_v30, %v305_v22  ;;  %v482_v35 = vadd.f32 %v470_v31, %v309_v23  ;;  %v462_v36 = vpop.f32.mrb[2].mxu0  ;;  %v472_v37 = vpop.f32.mrb[2].mxu1 }
 0x1a3   : > { %485 = vst [vmem:[#allocation2] sm:$0xff] %v477_v28  ;;  %489 = vst [vmem:[#allocation2 + $0x20] sm:$0xff] %v481_v29  ;;  %v479_v38 = vadd.f32 %v462_v36, %v306_v26  ;;  %v483_v39 = vadd.f32 %v472_v37, %v310_v27  ;;  %v464_v40 = vpop.f32.mrb[3].mxu0  ;;  %v474_v41 = vpop.f32.mrb[3].mxu1 }
 0x1a4   : > { %486 = vst [vmem:[#allocation2 + $0x8] sm:$0xff] %v478_v34  ;;  %490 = vst [vmem:[#allocation2 + $0x28] sm:$0xff] %v482_v35  ;;  %v480_v42 = vadd.f32 %v464_v40, %v307_v32  ;;  %v484_v43 = vadd.f32 %v474_v41, %v311_v33 }
 0x1a5   : > { %487 = vst [vmem:[#allocation2 + $0x10] sm:$0xff] %v479_v38  ;;  %491 = vst [vmem:[#allocation2 + $0x30] sm:$0xff] %v483_v39 }
 0x1a6   : > { %488 = vst [vmem:[#allocation2 + $0x18] sm:$0xff] %v480_v42  ;;  %492 = vst [vmem:[#allocation2 + $0x38] sm:$0xff] %v484_v43 }
 0x1aa   : > { %v501_v49 = vld [vmem:[#allocation2 + $0x20] sm:$0xff] }
 0x1ab   : > { %v502_v50 = vld [vmem:[#allocation2 + $0x28] sm:$0xff]  ;;  %v497_v51 = vld [vmem:[#allocation2] sm:$0xff]  ;;  %v533_v55 = vadd.f32 %v522_v53, %v501_v49 }
 0x1ac   : > { %v498_v52 = vld [vmem:[#allocation2 + $0x8] sm:$0xff]  ;;  %v534_v56 = vadd.f32 %v522_v53, %v502_v50  ;;  %v529_v57 = vadd.f32 %v512_v54, %v497_v51  ;;  %v503_v59 = vld [vmem:[#allocation2 + $0x30] sm:$0xff] }
 0x1ad   : > { %v530_v58 = vadd.f32 %v512_v54, %v498_v52  ;;  %v504_v60 = vld [vmem:[#allocation2 + $0x38] sm:$0xff]  ;;  %v499_v61 = vld [vmem:[#allocation2 + $0x10] sm:$0xff]  ;;  %v541_v63 = vmax.f32 %v533_v55, 0.0  ;;  %v535_v5 = vadd.f32 %v527_v3, %v503_v59 }
 0x1ae   : > { %v500_v62 = vld [vmem:[#allocation2 + $0x18] sm:$0xff]  ;;  %v542_v0 = vmax.f32 %v534_v56, 0.0  ;;  %v537_v1 = vmax.f32 %v529_v57, 0.0  ;;  %v536_v6 = vadd.f32 %v527_v3, %v504_v60  ;;  %v531_v7 = vadd.f32 %v517_v4, %v499_v61 }
 0x1af   : > { %v538_v2 = vmax.f32 %v530_v58, 0.0  ;;  %549 = vst [vmem:[%s1502_s30 + $0x20] sm:$0xff] %v541_v63  ;;  %v532_v8 = vadd.f32 %v517_v4, %v500_v62  ;;  %v543_v9 = vmax.f32 %v535_v5, 0.0 }
 0x1b0   : > { %550 = vst [vmem:[%s1502_s30 + $0x28] sm:$0xff] %v542_v0  ;;  %545 = vst [vmem:[%s1502_s30] sm:$0xff] %v537_v1  ;;  %v544_v10 = vmax.f32 %v536_v6, 0.0  ;;  %v539_v11 = vmax.f32 %v531_v7, 0.0 }
 0x1b1   : > { %546 = vst [vmem:[%s1502_s30 + $0x8] sm:$0xff] %v538_v2  ;;  %v540_v12 = vmax.f32 %v532_v8, 0.0  ;;  %551 = vst [vmem:[%s1502_s30 + $0x30] sm:$0xff] %v543_v9 }
 0x1b2   : > { %552 = vst [vmem:[%s1502_s30 + $0x38] sm:$0xff] %v544_v10  ;;  %547 = vst [vmem:[%s1502_s30 + $0x10] sm:$0xff] %v539_v11 }
 0x1b3   : > { %548 = vst [vmem:[%s1502_s30 + $0x18] sm:$0xff] %v540_v12 }
 0x1b4 PF: > { %s1678_s28 = sld [smem:[#allocation23_spill]]  ;;  %s567_s22 = sshll.u32 %s1502_s30, 4  ;;  %s1553_s22 = int_to_ptr.vmem [resolvable:$true] %s567_s22 }
 0x1b5   : > { %s1679_s10 = sld [smem:[#allocation30_spill]]  ;;  %s1557_s23 = scalar_lea.sflag [#allocation8], %s279_s20 }
 0x1b6   : > { %s998_s0 = scalar_lea.vmem %s1553_s22, 1024  ;;  %p1681_p6 = scmp.ne.s32.totalorder %s1662_s25, 0 }
 0x1b7   : > { %p999_p10 = scmp.ne.s32.totalorder %s1553_s22, %s998_s0  ;;  %s1163_s29 = smov [#allocation11]  }
 0x1b8   : > { %s1002_s21 = sshll.u32 %s1163_s29, 4  ;;  %s1003_s21 = int_to_ptr.vmem [resolvable:$false] %s1002_s21 }
 0x1b9   : > { %p1000_p12 = pnand %p999_p10, %p1681_p6  ;;  %s1004_s12 = scalar_lea.vmem %s1003_s21, 2048 }
 0x1ba   : > { %s720_s7 = sshll.u32 %s1678_s28, 10  ;;  %p1005_p13 = scmp.lt.s32.totalorder %s1553_s22, %s1003_s21 }
 0x1bb   : > { %s1680_s27 = smov %s1679_s10  ;;  %s1550_s5 = scalar_lea.hbm %s1679_s10, %s720_s7 }
 0x1bc   : > { %p1001_p8 = pneg %p1000_p12  ;;  %p1006_p0 = scmp.lt.s32.totalorder %s1004_s12, %s998_s0 }
 0x1be   : > { %p1007_p3 = por %p1006_p0, %p1005_p13 }
 0x1c0   : > { %p1008_p1 = pnand %p1007_p3, %p1001_p8 }
 0x1c2   : > { %1011 = shalt.err (!%p1008_p1)
}
 0x1c3   : > { %s1012_s20 = scalar_lea.hbm %s1550_s5, 1024  ;;  %s1016_s2 = scalar_lea.hbm %s1680_s27, 14336 }
 0x1c4   : > { %p1013_p5 = scmp.ne.s32.totalorder %s1550_s5, %s1012_s20  ;;  %p1017_p11 = scmp.lt.u32.totalorder %s1550_s5, %s1680_s27 }
 0x1c5   : > { %p1018_p7 = scmp.lt.u32.totalorder %s1016_s2, %s1012_s20  ;;  %p1020_p10 = scmp.lt.u32.totalorder %s1012_s20, %s1550_s5 }
 0x1c6   : > { %p1014_p9 = pnand %p1013_p5, %p1681_p6 }
 0x1c7   : > { %p1019_p4 = por %p1018_p7, %p1017_p11 }
 0x1c8   : > { %p1015_p2 = pneg %p1014_p9 }
 0x1c9   : > { %p1021_p12 = por %p1020_p10, %p1019_p4 }
 0x1cb   : > { %p1022_p8 = pnand %p1021_p12, %p1015_p2 }
 0x1cd   : > { %1025 = shalt.err (!%p1022_p8)
}
 0x1ce   : > { %s1164_s15 = smov 256   ;;  %s1165_s28 = smov 16  }
 0x1cf   : > { %746 = dma.vmem_to_hbm [thread:$0]  (%p1681_p6), %s1553_s22, 1024, %s1550_s5, %s1557_s23, %s1164_s15, %s1164_s15, %s1165_s28  }
 0x1d0 PF: > { %s1682_s7 = sld [smem:[#allocation20_spill]]  ;;  %s1683_s24 = sld [smem:[#allocation27_spill]] }
 0x1d1   : > { %p764_p13 = scmp.ge.s32.totalorder %s1150_s19, 2 }
 0x1d6   : > { %s582_s16 = sand.u32 1, %s1682_s7   ;;  %p1684_p0 = scmp.ne.s32.totalorder %s1683_s24, 0 }
 0x1d7   : > { %s583_s10 = scalar_lea.sflag [#allocation8], %s582_s16 }
 0x1d8   : > { %p760_p3 = pnand %p764_p13, %p1684_p0 }
 0x1da   : > { %1093 = dma.done.wait (!%p760_p3), %s583_s10, 1024  }
 0x1db   : > { %1095 = vsyncadd (!%p760_p3), %s583_s10, 4294966272  ;;  %s32_s19 = sadd.s32 1, %s1150_s19   ;;  %s1686_s25 = sld [smem:[#allocation21_spill]] }
 0x1dc   : > { %p1586_p1 = scmp.ge.s32.totalorder %s32_s19, 100   ;;  %s1687_s9 = sld [smem:[#allocation26_spill]] }
 0x1dd   : > { %s1688_s5 = sld [smem:[#allocation22_spill]]  ;;  %s1689_s14 = sld [smem:[#allocation28_spill]] }
 0x1de   : > { %s1690_s22 = sld [smem:[#allocation24_spill]]  ;;  %s1691_s23 = sld [smem:[#allocation25_spill]] }
 0x1df   : > { %s1692_s7 = smov %s1102_s8  ;;  %s1694_s10 = smov %s1114_s11 }
 0x1e0   : > { %s1695_s11 = smov %s1118_s1  ;;  %s1696_s1 = smov %s1433_s6 }
 0x1e1   : > { %s1693_s8 = smov %s1686_s25  ;;  %s1697_s12 = smov %s1126_s13 }
 0x1e2   : > { %s1699_s15 = smov %s1142_s17  ;;  %s1700_s16 = smov %s1146_s18 }
 0x1e3   : > { %s1698_s13 = smov %s1688_s5  ;;  %31 = sbr.rel (!%p1586_p1) target bundleno = 35 (0x23), region = 98 }
 0x1e4   : > { %s1701_s17 = smov %s1690_s22  ;;  %s1702_s18 = smov %s1691_s23 }
 0x1ea   :  { %588 = vsyncpa [#allocation7], 1 }
 0x1eb   :  { %590 = vsyncpa [#allocation7 + $0x1], 1 }
 0x1ec   :  { %591 = vsyncpa [#allocation10], 1 }
 0x1ed   :  { %593 = vsyncpa [#allocation10 + $0x1], 1 }
 0x1ee   :  { %594 = vsyncpa [#allocation8], 1 }
 0x1ef   :  { %596 = vsyncpa [#allocation8 + $0x1], 1 }

</bundles_post_ra>
